<compile_context>
chip_gen: v7x
topology: tpu7x:2x2x1
jax: 0.10.0
libtpu: 0.0.40
codegen_flags: <defaults>
</compile_context>

<pallas_src>
import functools

import jax
import jax.numpy as jnp
from jax.experimental import pallas as pl
from jax.experimental.pallas import tpu as pltpu

DIM = 64  # the module hard-codes self.dim = 64


def _round_up(x: int, m: int) -> int:
    return ((x + m - 1) // m) * m


def _noise_gating_kernel(x_ref, w_ref, noise_ref, out_ref):
    # x_ref:     (TN, DIM)      bf16 tile of tokens
    # w_ref:     (DIM, num_moe) bf16 weight (transposed vs. PyTorch storage),
    #                           constant index_map -> resident across the grid
    # noise_ref: (TN, num_moe)  f32 pre-sampled gaussian noise * noise_std
    # out_ref:   (TN, num_moe)  f32 softmax probabilities
    logits = jnp.dot(
        x_ref[...], w_ref[...], preferred_element_type=jnp.float32
    )
    logits = logits + noise_ref[...]

    # numerically-stable softmax over the expert (last) axis, all in f32
    m = jnp.max(logits, axis=-1, keepdims=True)
    e = jnp.exp(logits - m)
    denom = jnp.sum(e, axis=-1, keepdims=True)
    out_ref[...] = (e / denom).astype(out_ref.dtype)


@functools.partial(jax.jit, static_argnames=("tile_n",))
def noise_gating(x, w_t, noise, *, tile_n=1024):
    """x: [N, DIM], w_t: [DIM, num_moe], noise: [N, num_moe] f32 -> probs [N, num_moe] f32."""
    n, dim = x.shape
    num_moe = w_t.shape[1]
    assert dim == DIM

    # Halve the dominant (x) HBM stream; MXU takes bf16 natively on v5e/v6e/v7x
    # and accumulates in f32 via preferred_element_type inside the kernel.
    x = x.astype(jnp.bfloat16)
    w_t = w_t.astype(jnp.bfloat16)
    noise = noise.astype(jnp.float32)

    # Big row tiles amortize the ~0.35us per-grid-step pipeline overhead.
    # Clamp the tile to the (8-rounded) token count so tiny inputs aren't
    # padded to a huge block, then pad N up to a multiple of the tile.
    tile = min(tile_n, _round_up(n, 8))
    n_pad = _round_up(n, tile)
    if n_pad != n:
        x = jnp.pad(x, ((0, n_pad - n), (0, 0)))
        noise = jnp.pad(noise, ((0, n_pad - n), (0, 0)))

    grid = (n_pad // tile,)

    cost = pl.CostEstimate(
        flops=2 * n_pad * DIM * num_moe,
        transcendentals=n_pad * num_moe,
        bytes_accessed=(
            n_pad * DIM * 2          # bf16 x read
            + DIM * num_moe * 2      # bf16 weight read (resident, read once)
            + n_pad * num_moe * 4    # f32 noise read
            + n_pad * num_moe * 4    # f32 probs write
        ),
    )

    out = pl.pallas_call(
        _noise_gating_kernel,
        out_shape=jax.ShapeDtypeStruct((n_pad, num_moe), jnp.float32),
        grid_spec=pltpu.PrefetchScalarGridSpec(
            num_scalar_prefetch=0,
            grid=grid,
            in_specs=[
                pl.BlockSpec((tile, DIM), lambda i: (i, 0)),
                pl.BlockSpec((DIM, num_moe), lambda i: (0, 0)),
                pl.BlockSpec((tile, num_moe), lambda i: (i, 0)),
            ],
            out_specs=pl.BlockSpec((tile, num_moe), lambda i: (i, 0)),
        ),
        compiler_params=pltpu.CompilerParams(
            dimension_semantics=("parallel",),
        ),
        cost_estimate=cost,
    )(x, w_t, noise)

    return out[:n]


def noise_module_forward(x, weight, noise_std, key, *, tile_n=1024):
    """Mirrors Noise.forward. x: [..., DIM], weight: [num_moe, DIM] (PyTorch layout)."""
    num_moe = weight.shape[0]
    lead_shape = x.shape[:-1]
    x2 = x.reshape(-1, DIM)

    # randn_like(logits) * noise_std  (sampled with jax.random for bit-exact
    # reproducibility; added in f32 inside the kernel).
    noise = (
        jax.random.normal(key, (x2.shape[0], num_moe), dtype=jnp.float32)
        * noise_std
    )

    probs = noise_gating(x2, weight.T, noise, tile_n=tile_n)
    return probs.reshape(*lead_shape, num_moe)


if __name__ == "__main__":
    key = jax.random.PRNGKey(0)
    k_x, k_w, k_noise, k_x2, k_noise2 = jax.random.split(key, 5)

    num_moe, noise_std = 8, 0.1

    # Deterministic parameter init (nn.Linear-style uniform bound 1/sqrt(fan_in)).
    bound = 1.0 / jnp.sqrt(jnp.float32(DIM))
    weight = jax.random.uniform(
        k_w, (num_moe, DIM), minval=-bound, maxval=bound, dtype=jnp.float32
    )

    def reference(x_in, w_in, noise_in):
        # Matches what the kernel computes: bf16-quantized x/W, f32 accumulation,
        # f32 noise-add + softmax.
        xq = x_in.astype(jnp.bfloat16).astype(jnp.float32)
        wq = w_in.astype(jnp.bfloat16).astype(jnp.float32)
        logits = (
            jnp.einsum("...d,md->...m", xq, wq, precision="highest") + noise_in
        )
        return jax.nn.softmax(logits, axis=-1)

    # Case 1: batch=2, seq=8 (token count divisible by 8, no padding needed).
    x = jax.random.normal(k_x, (2, 8, DIM), dtype=jnp.float32)
    probs = jax.block_until_ready(
        noise_module_forward(x, weight, noise_std, k_noise)
    )
    assert probs.shape == (2, 8, num_moe)
    row_sums = jnp.sum(probs, axis=-1)
    assert jnp.allclose(row_sums, jnp.ones_like(row_sums), atol=1e-5)

    noise_ref = (
        jax.random.normal(k_noise, (2 * 8, num_moe), dtype=jnp.float32)
        * noise_std
    ).reshape(2, 8, num_moe)
    probs_ref = reference(x, weight, noise_ref)
    assert jnp.allclose(probs, probs_ref, atol=2e-3)

    # Case 2: ragged token count (3*5 = 15 tokens) exercises the pad + slice path.
    x2 = jax.random.normal(k_x2, (3, 5, DIM), dtype=jnp.float32)
    probs2 = jax.block_until_ready(
        noise_module_forward(x2, weight, noise_std, k_noise2)
    )
    assert probs2.shape == (3, 5, num_moe)
    row_sums2 = jnp.sum(probs2, axis=-1)
    assert jnp.allclose(row_sums2, jnp.ones_like(row_sums2), atol=1e-5)

    noise_ref2 = (
        jax.random.normal(k_noise2, (3 * 5, num_moe), dtype=jnp.float32)
        * noise_std
    ).reshape(3, 5, num_moe)
    probs_ref2 = reference(x2, weight, noise_ref2)
    assert jnp.allclose(probs2, probs_ref2, atol=2e-3)

    print("KERNEL_OK")
</pallas_src>

<mosaic_0001>
module attributes {stable_mosaic.version = 11 : i64} {
  func.func @_noise_gating_kernel(%arg0: i32, %arg1: memref<16x64xbf16, #tpu.memory_space<vmem>>, %arg2: memref<64x8xbf16, #tpu.memory_space<vmem>>, %arg3: memref<16x8xf32, #tpu.memory_space<vmem>>, %arg4: memref<16x8xf32, #tpu.memory_space<vmem>>) attributes {dimension_semantics = [#tpu.dimension_semantics<parallel>], iteration_bounds = array<i64: 1>, scalar_prefetch = 0 : i64, scratch_operands = 0 : i64, tpu.core_type = #tpu.core_type<tc>, window_params = [{transform_indices = @transform_0, window_bounds = array<i64: 16, 64>}, {pipeline_mode = #tpu.pipeline_mode<synchronous>, transform_indices = @transform_1, window_bounds = array<i64: 64, 8>}, {transform_indices = @transform_2, window_bounds = array<i64: 16, 8>}, {transform_indices = @transform_3, window_bounds = array<i64: 16, 8>}]} {
    %c0 = arith.constant 0 : index
    %c0_0 = arith.constant 0 : index
    %0 = vector.load %arg1[%c0, %c0_0] : memref<16x64xbf16, #tpu.memory_space<vmem>>, vector<16x64xbf16>
    %c0_1 = arith.constant 0 : index
    %c0_2 = arith.constant 0 : index
    %1 = vector.load %arg2[%c0_1, %c0_2] : memref<64x8xbf16, #tpu.memory_space<vmem>>, vector<64x8xbf16>
    %cst = arith.constant dense<0.000000e+00> : vector<16x8xf32>
    %2 = tpu.matmul %0, %1, %cst {dimension_numbers = #tpu.dot_dimension_numbers<[1], [0], [0], [1], [0, 0, 1, 1], [], []>} : vector<16x64xbf16>, vector<64x8xbf16>, vector<16x8xf32> -> vector<16x8xf32>
    %c0_3 = arith.constant 0 : index
    %c0_4 = arith.constant 0 : index
    %3 = vector.load %arg3[%c0_3, %c0_4] : memref<16x8xf32, #tpu.memory_space<vmem>>, vector<16x8xf32>
    %4 = arith.addf %2, %3 : vector<16x8xf32>
    %cst_5 = arith.constant dense<0xFF800000> : vector<16xf32>
    %5 = vector.multi_reduction <maximumf>, %4, %cst_5 [1] : vector<16x8xf32> to vector<16xf32>
    %6 = vector.shape_cast %5 : vector<16xf32> to vector<16x1xf32>
    %7 = vector.broadcast %6 : vector<16x1xf32> to vector<16x8xf32>
    %8 = arith.subf %4, %7 : vector<16x8xf32>
    %9 = math.exp %8 : vector<16x8xf32>
    %cst_6 = arith.constant dense<0.000000e+00> : vector<16xf32>
    %10 = vector.multi_reduction <add>, %9, %cst_6 [1] : vector<16x8xf32> to vector<16xf32>
    %11 = vector.shape_cast %10 : vector<16xf32> to vector<16x1xf32>
    %12 = vector.broadcast %11 : vector<16x1xf32> to vector<16x8xf32>
    %13 = arith.divf %9, %12 : vector<16x8xf32>
    %c0_7 = arith.constant 0 : index
    %c0_8 = arith.constant 0 : index
    %14 = vector.load %arg4[%c0_7, %c0_8] : memref<16x8xf32, #tpu.memory_space<vmem>>, vector<16x8xf32>
    tpu.vector_store %arg4[%c0_7, %c0_8], %13 {strides = array<i32>} : memref<16x8xf32, #tpu.memory_space<vmem>>, vector<16x8xf32>,
    return
  }
  func.func @transform_0(%arg0: i32) -> (i32, i32) {
    %c0_i32 = arith.constant 0 : i32
    %c0_i32_0 = arith.constant 0 : i32
    return %arg0, %c0_i32 : i32, i32
  }
  func.func @transform_1(%arg0: i32) -> (i32, i32) {
    %c0_i32 = arith.constant 0 : i32
    %c0_i32_0 = arith.constant 0 : i32
    %c0_i32_1 = arith.constant 0 : i32
    return %c0_i32, %c0_i32_0 : i32, i32
  }
  func.func @transform_2(%arg0: i32) -> (i32, i32) {
    %c0_i32 = arith.constant 0 : i32
    %c0_i32_0 = arith.constant 0 : i32
    return %arg0, %c0_i32 : i32, i32
  }
  func.func @transform_3(%arg0: i32) -> (i32, i32) {
    %c0_i32 = arith.constant 0 : i32
    %c0_i32_0 = arith.constant 0 : i32
    return %arg0, %c0_i32 : i32, i32
  }
}

</mosaic_0001>

<bundles_post_ra>
// kernel: noise_gating.1
= control target key start
LH: loop header
LB: loop body
LE: loop exit
PB: predicated region body
PF: predicated region fallthrough
CT: control target
= control target key end

     0   :  { %v168_v0 = vmov 0.0   ;;  %vm169_vm0 = vmmov 0   ;;  %vm56_vm1 = vcmask 523264   ;;  %vm101_vm2 = vcmask 64512   ;;  %s223_s1 = inlined_call_operand.vmem [shape: bf16[64,8], index: 1, kind: input, shape index: {}]   ;;  %s224_s0 = inlined_call_operand.vmem [shape: bf16[16,64], index: 0, kind: input, shape index: {}]   ;;  %s225_s2 = inlined_call_operand.vmem [shape: f32[16,8], index: 2, kind: input, shape index: {}]   ;;  %s226_s3 = inlined_call_operand.vmem [shape: f32[16,8], index: 3, kind: output, shape index: {}]  }
   0x1   :  { %141 = vmatprep.subr.bf16.mxu0 %v168_v0  ;;  %v155_v1 = vld [vmem:[%s223_s1] sm:$0xff]   ;;  %149 = vmatprep.mubr.msk.bf16.mxu0 %vm169_vm0, %v168_v0  ;;  %v156_v2 = vld [vmem:[%s223_s1 + $0x8] sm:$0xff]   ;;  %v157_v3 = vld [vmem:[%s223_s1 + $0x10] sm:$0xff]  }
   0x2   :  { %142 = vmatpush3.bf16.msra.mxu0 %v155_v1  ;;  %v158_v4 = vld [vmem:[%s223_s1 + $0x18] sm:$0xff]   ;;  %v159_v5 = vld [vmem:[%s224_s0] sm:$0xff]   ;;  %v26_v8 = vld [vmem:[%s225_s2 + $0x8] sm:$0xff] }
   0x3   :  { %143 = vmatprep.subr.bf16.mxu0 %v168_v0  ;;  %v25_v6 = vld [vmem:[%s225_s2] sm:$0xff] }
   0x6   :  { %144 = vmatpush3.bf16.msra.mxu0 %v156_v2 }
   0x7   :  { %145 = vmatprep.subr.bf16.mxu0 %v168_v0 }
   0xa   :  { %146 = vmatpush3.bf16.msra.mxu0 %v157_v3 }
   0xb   :  { %147 = vmatprep.subr.bf16.mxu0 %v168_v0 }
   0xe   :  { %148 = vmatpush3.bf16.msra.mxu0 %v158_v4 }
  0x11   :  { %150 = vmatmul.mubr.msk.bf16.vlgmr.msra.gmra.mrb[0].mxu0 %vm56_vm1, %v159_v5 }
  0xe4   :  { %v94_v7 = vpop.f32.mrb[0].mxu0 }
  0xe5   :  { %v95_v9 = vadd.f32 %v94_v7, %v25_v6  ;;  %v151_v10 = vpop.f32.mrb[1].mxu0 }
  0xe6   :  { %v97_v11 = vpop.f32.mrb[2].mxu0 }
  0xe7   :  { %v98_v12 = vadd.f32 %v97_v11, %v26_v8  ;;  %v152_v13 = vpop.f32.mrb[3].mxu0  ;;  %v102_v14 = vsel %vm101_vm2, %v95_v9, -inf }
  0xe8   :  { %103 = vmax.xlane.f32.xlu0 %v102_v14 }
  0xe9   :  { %v105_v15 = vsel %vm101_vm2, %v98_v12, -inf }
  0xec   :  { %106 = vmax.xlane.f32.xlu0 %v105_v15 }
 0x175   :  { %v104_v16 = vpop.xlane.xlu0 %103 }
 0x176   :  { %v108_v17 = vsub.f32 %v95_v9, %v104_v16 }
 0x178   :  { %v110_v18 = vmul.f32 1.442695, %v108_v17 }
 0x179   :  { %v107_v19 = vpop.xlane.xlu0 %106 }
 0x17a   :  { %160 = vpow2.f32 %v110_v18  ;;  %v109_v20 = vsub.f32 %v98_v12, %v107_v19 }
 0x17c   :  { %v112_v21 = vmul.f32 1.442695, %v109_v20 }
 0x17e   :  { %162 = vpow2.f32 %v112_v21 }
 0x184   :  { %v161_v22 = vpop.eup %160 }
 0x185   :  { %v114_v23 = vsel %vm101_vm2, %v161_v22, 0.0 }
 0x186   :  { %115 = vadd.xlane.f32.xlu1 %v114_v23 }
 0x188   :  { %v163_v24 = vpop.eup %162 }
 0x189   :  { %v117_v25 = vsel %vm101_vm2, %v163_v24, 0.0 }
 0x18a   :  { %118 = vadd.xlane.f32.xlu1 %v117_v25 }
 0x213   :  { %v116_v26 = vpop.xlane.xlu1 %115 }
 0x214   :  { %164 = vrcp.f32 %v116_v26 }
 0x217   :  { %v119_v27 = vpop.xlane.xlu1 %118 }
 0x218   :  { %166 = vrcp.f32 %v119_v27 }
 0x21e   :  { %v165_v28 = vpop.eup %164 }
 0x21f   :  { %v121_v29 = vmul.f32 %v165_v28, %v161_v22 }
 0x221   :  { %124 = vst.msk [vmem:[%s226_s3] sm:$0xff] %vm101_vm2, %v121_v29 }
 0x222   :  { %v167_v30 = vpop.eup %166 }
 0x223   :  { %v123_v31 = vmul.f32 %v167_v30, %v163_v24 }
 0x225   :  { %125 = vst.msk [vmem:[%s226_s3 + $0x8] sm:$0xff] %vm101_vm2, %v123_v31 }

</bundles_post_ra>
